<compile_context>
chip_gen: v7x
topology: tpu7x:2x2x1
jax: 0.10.0
libtpu: 0.0.40
codegen_flags: <defaults>
</compile_context>

<pallas_src>
import jax
import jax.numpy as jnp
from jax.experimental import pallas as pl
from jax.experimental.pallas import tpu as pltpu


def critic_kernel(state_ref, action_ref, w1s_ref, w1a_ref, b1_ref,
                  w2_ref, b2_ref, w3_ref, b3_ref, q_ref):
    """One batch tile: q = l3(relu(l2(relu(l1(cat[state, action])))))."""
    f32 = jnp.float32

    # Layer 1 — concat fused into two MXU dots (bf16 inputs, f32 accumulation):
    #   cat([s, a]) @ W1  ==  s @ W1[:S] + a @ W1[S:]
    h1 = jnp.dot(state_ref[...], w1s_ref[...], preferred_element_type=f32)
    h1 = h1 + jnp.dot(action_ref[...], w1a_ref[...], preferred_element_type=f32)
    h1 = jnp.maximum(h1 + b1_ref[...], 0.0)                  # bias + ReLU in f32 (VPU)

    # Layer 2 — bf16 MXU dot, f32 accumulate / bias / ReLU.
    h2 = jnp.dot(h1.astype(jnp.bfloat16), w2_ref[...], preferred_element_type=f32)
    h2 = jnp.maximum(h2 + b2_ref[...], 0.0)

    # Layer 3 — avoid an N=1 MXU matmul (1/128..1/256 of output columns + full
    # push/drain latency): VPU multiply with the (1,H) weight row, XLU lane sum.
    q = jnp.sum(h2 * w3_ref[...], axis=-1, keepdims=True)    # (TB, 1) f32
    q_ref[...] = q + b3_ref[0]                               # scalar bias from SMEM


def critic_forward(state, action, params, *, batch_tile=256):
    """state: (B, state_dim), action: (B, action_dim) -> q: (B, 1) float32."""
    w1, b1, w2, b2, w3, b3 = params
    B, S = state.shape
    A = action.shape[1]
    H = w1.shape[1]

    # Split W1 so the concat happens "for free" inside the kernel; bf16 for the
    # MXU operands (halves weight DMA bytes), f32 for everything elementwise.
    w1s = w1[:S].astype(jnp.bfloat16)                 # (S, H)
    w1a = w1[S:].astype(jnp.bfloat16)                 # (A, H)
    w2b = w2.astype(jnp.bfloat16)                     # (H, H)
    w3r = w3.reshape(1, H).astype(jnp.float32)        # (1, H) row for the VPU layer 3
    b1f = b1.astype(jnp.float32)                      # (1, H)
    b2f = b2.astype(jnp.float32)                      # (1, H)
    b3s = b3.reshape(1).astype(jnp.float32)           # (1,)  scalar -> SMEM

    state_b = state.astype(jnp.bfloat16)
    action_b = action.astype(jnp.bfloat16)

    # Batch tiling: one tile if the batch is small, otherwise 256-row tiles
    # (multiple of 8 and 128 -> fills the MXU M dim, bounds VMEM residency).
    if B <= batch_tile:
        TB, B_pad = B, B
    else:
        TB = batch_tile
        B_pad = pl.cdiv(B, TB) * TB
        pad = B_pad - B
        if pad:
            state_b = jnp.pad(state_b, ((0, pad), (0, 0)))
            action_b = jnp.pad(action_b, ((0, pad), (0, 0)))
    n_tiles = B_pad // TB

    # Weights / biases: constant block index -> stay resident in VMEM across
    # the whole (parallel) batch grid.
    def resident(shape):
        return pl.BlockSpec(shape, lambda i: (0, 0))

    q_pad = pl.pallas_call(
        critic_kernel,
        out_shape=jax.ShapeDtypeStruct((B_pad, 1), jnp.float32),
        grid=(n_tiles,),
        in_specs=[
            pl.BlockSpec((TB, S), lambda i: (i, 0)),              # state tile
            pl.BlockSpec((TB, A), lambda i: (i, 0)),              # action tile
            resident((S, H)),                                     # W1[:S]
            resident((A, H)),                                     # W1[S:]
            resident((1, H)),                                     # b1
            resident((H, H)),                                     # W2
            resident((1, H)),                                     # b2
            resident((1, H)),                                     # w3 row
            pl.BlockSpec(memory_space=pltpu.MemorySpace.SMEM),    # b3 scalar
        ],
        out_specs=pl.BlockSpec((TB, 1), lambda i: (i, 0)),
        compiler_params=pltpu.CompilerParams(
            dimension_semantics=("parallel",),
        ),
    )(state_b, action_b, w1s, w1a, b1f, w2b, b2f, w3r, b3s)

    return q_pad[:B]


def init_critic_params(key, state_dim, action_dim, hidden_dim=256):
    """Deterministic init mimicking PyTorch nn.Linear (uniform +-1/sqrt(fan_in)).
    Weights stored as (in_features, out_features)."""
    def linear(key, fan_in, fan_out):
        kw, kb = jax.random.split(key)
        bound = 1.0 / jnp.sqrt(fan_in)
        w = jax.random.uniform(kw, (fan_in, fan_out), jnp.float32, -bound, bound)
        b = jax.random.uniform(kb, (1, fan_out), jnp.float32, -bound, bound)
        return w, b

    k1, k2, k3 = jax.random.split(key, 3)
    w1, b1 = linear(k1, state_dim + action_dim, hidden_dim)
    w2, b2 = linear(k2, hidden_dim, hidden_dim)
    w3, b3 = linear(k3, hidden_dim, 1)
    return (w1, b1, w2, b2, w3, b3)


if __name__ == "__main__":
    # Small shapes consistent with the module's forward.
    B, STATE_DIM, ACTION_DIM, HIDDEN = 8, 16, 8, 32

    key = jax.random.PRNGKey(0)
    k_state, k_action, k_params = jax.random.split(key, 3)

    state = jax.random.normal(k_state, (B, STATE_DIM), jnp.float32)
    action = jax.random.normal(k_action, (B, ACTION_DIM), jnp.float32)
    params = init_critic_params(k_params, STATE_DIM, ACTION_DIM, HIDDEN)

    q = critic_forward(state, action, params)
    q = jax.block_until_ready(q)

    # Pure-JAX f32 reference (kernel uses bf16 MXU inputs -> loose tolerance).
    w1, b1, w2, b2, w3, b3 = params
    sa = jnp.concatenate([state, action], axis=1)
    ref = jnp.maximum(sa @ w1 + b1, 0.0)
    ref = jnp.maximum(ref @ w2 + b2, 0.0)
    ref = ref @ w3 + b3

    assert q.shape == (B, 1), q.shape
    assert jnp.allclose(q, ref, atol=3e-2, rtol=3e-2), "mismatch vs reference"

    print("KERNEL_OK")
</pallas_src>

<mosaic_0001>
module attributes {stable_mosaic.version = 11 : i64} {
  func.func @critic_kernel(%arg0: i32, %arg1: memref<8x16xbf16, #tpu.memory_space<vmem>>, %arg2: memref<8x8xbf16, #tpu.memory_space<vmem>>, %arg3: memref<16x32xbf16, #tpu.memory_space<vmem>>, %arg4: memref<8x32xbf16, #tpu.memory_space<vmem>>, %arg5: memref<1x32xf32, #tpu.memory_space<vmem>>, %arg6: memref<32x32xbf16, #tpu.memory_space<vmem>>, %arg7: memref<1x32xf32, #tpu.memory_space<vmem>>, %arg8: memref<1x32xf32, #tpu.memory_space<vmem>>, %arg9: memref<1xf32, #tpu.memory_space<smem>>, %arg10: memref<8x1xf32, #tpu.memory_space<vmem>>) attributes {dimension_semantics = [#tpu.dimension_semantics<parallel>], iteration_bounds = array<i64: 1>, scalar_prefetch = 0 : i64, scratch_operands = 0 : i64, tpu.core_type = #tpu.core_type<tc>, window_params = [{transform_indices = @transform_0, window_bounds = array<i64: 8, 16>}, {transform_indices = @transform_1, window_bounds = array<i64: 8, 8>}, {pipeline_mode = #tpu.pipeline_mode<synchronous>, transform_indices = @transform_2, window_bounds = array<i64: 16, 32>}, {pipeline_mode = #tpu.pipeline_mode<synchronous>, transform_indices = @transform_3, window_bounds = array<i64: 8, 32>}, {pipeline_mode = #tpu.pipeline_mode<synchronous>, transform_indices = @transform_4, window_bounds = array<i64: 1, 32>}, {pipeline_mode = #tpu.pipeline_mode<synchronous>, transform_indices = @transform_5, window_bounds = array<i64: 32, 32>}, {pipeline_mode = #tpu.pipeline_mode<synchronous>, transform_indices = @transform_6, window_bounds = array<i64: 1, 32>}, {pipeline_mode = #tpu.pipeline_mode<synchronous>, transform_indices = @transform_7, window_bounds = array<i64: 1, 32>}, {transform_indices = @transform_8, window_bounds = array<i64: 1>}, {transform_indices = @transform_9, window_bounds = array<i64: 8, 1>}]} {
    %c0 = arith.constant 0 : index
    %c0_0 = arith.constant 0 : index
    %0 = vector.load %arg1[%c0, %c0_0] : memref<8x16xbf16, #tpu.memory_space<vmem>>, vector<8x16xbf16>
    %c0_1 = arith.constant 0 : index
    %c0_2 = arith.constant 0 : index
    %1 = vector.load %arg3[%c0_1, %c0_2] : memref<16x32xbf16, #tpu.memory_space<vmem>>, vector<16x32xbf16>
    %cst = arith.constant dense<0.000000e+00> : vector<8x32xf32>
    %2 = tpu.matmul %0, %1, %cst {dimension_numbers = #tpu.dot_dimension_numbers<[1], [0], [0], [1], [0, 0, 1, 1], [], []>} : vector<8x16xbf16>, vector<16x32xbf16>, vector<8x32xf32> -> vector<8x32xf32>
    %c0_3 = arith.constant 0 : index
    %c0_4 = arith.constant 0 : index
    %3 = vector.load %arg2[%c0_3, %c0_4] : memref<8x8xbf16, #tpu.memory_space<vmem>>, vector<8x8xbf16>
    %c0_5 = arith.constant 0 : index
    %c0_6 = arith.constant 0 : index
    %4 = vector.load %arg4[%c0_5, %c0_6] : memref<8x32xbf16, #tpu.memory_space<vmem>>, vector<8x32xbf16>
    %cst_7 = arith.constant dense<0.000000e+00> : vector<8x32xf32>
    %5 = tpu.matmul %3, %4, %cst_7 {dimension_numbers = #tpu.dot_dimension_numbers<[1], [0], [0], [1], [0, 0, 1, 1], [], []>} : vector<8x8xbf16>, vector<8x32xbf16>, vector<8x32xf32> -> vector<8x32xf32>
    %6 = arith.addf %2, %5 : vector<8x32xf32>
    %c0_8 = arith.constant 0 : index
    %c0_9 = arith.constant 0 : index
    %7 = vector.load %arg5[%c0_8, %c0_9] : memref<1x32xf32, #tpu.memory_space<vmem>>, vector<1x32xf32>
    %8 = vector.broadcast %7 : vector<1x32xf32> to vector<8x32xf32>
    %9 = arith.addf %6, %8 : vector<8x32xf32>
    %cst_10 = arith.constant 0.000000e+00 : f32
    %10 = vector.broadcast %cst_10 : f32 to vector<8x32xf32>
    %11 = arith.maximumf %9, %10 : vector<8x32xf32>
    %12 = arith.truncf %11 : vector<8x32xf32> to vector<8x32xbf16>
    %c0_11 = arith.constant 0 : index
    %c0_12 = arith.constant 0 : index
    %13 = vector.load %arg6[%c0_11, %c0_12] : memref<32x32xbf16, #tpu.memory_space<vmem>>, vector<32x32xbf16>
    %cst_13 = arith.constant dense<0.000000e+00> : vector<8x32xf32>
    %14 = tpu.matmul %12, %13, %cst_13 {dimension_numbers = #tpu.dot_dimension_numbers<[1], [0], [0], [1], [0, 0, 1, 1], [], []>} : vector<8x32xbf16>, vector<32x32xbf16>, vector<8x32xf32> -> vector<8x32xf32>
    %c0_14 = arith.constant 0 : index
    %c0_15 = arith.constant 0 : index
    %15 = vector.load %arg7[%c0_14, %c0_15] : memref<1x32xf32, #tpu.memory_space<vmem>>, vector<1x32xf32>
    %16 = vector.broadcast %15 : vector<1x32xf32> to vector<8x32xf32>
    %17 = arith.addf %14, %16 : vector<8x32xf32>
    %cst_16 = arith.constant 0.000000e+00 : f32
    %18 = vector.broadcast %cst_16 : f32 to vector<8x32xf32>
    %19 = arith.maximumf %17, %18 : vector<8x32xf32>
    %c0_17 = arith.constant 0 : index
    %c0_18 = arith.constant 0 : index
    %20 = vector.load %arg8[%c0_17, %c0_18] : memref<1x32xf32, #tpu.memory_space<vmem>>, vector<1x32xf32>
    %21 = vector.broadcast %20 : vector<1x32xf32> to vector<8x32xf32>
    %22 = arith.mulf %19, %21 : vector<8x32xf32>
    %cst_19 = arith.constant dense<0.000000e+00> : vector<8xf32>
    %23 = vector.multi_reduction <add>, %22, %cst_19 [1] : vector<8x32xf32> to vector<8xf32>
    %24 = vector.shape_cast %23 : vector<8xf32> to vector<8x1xf32>
    %c0_20 = arith.constant 0 : index
    %25 = memref.load %arg9[%c0_20] : memref<1xf32, #tpu.memory_space<smem>>
    %26 = vector.broadcast %25 : f32 to vector<8x1xf32>
    %27 = arith.addf %24, %26 : vector<8x1xf32>
    %c0_21 = arith.constant 0 : index
    %c0_22 = arith.constant 0 : index
    %28 = vector.load %arg10[%c0_21, %c0_22] : memref<8x1xf32, #tpu.memory_space<vmem>>, vector<8x1xf32>
    tpu.vector_store %arg10[%c0_21, %c0_22], %27 {strides = array<i32>} : memref<8x1xf32, #tpu.memory_space<vmem>>, vector<8x1xf32>,
    return
  }
  func.func @transform_0(%arg0: i32) -> (i32, i32) {
    %c0_i32 = arith.constant 0 : i32
    %c0_i32_0 = arith.constant 0 : i32
    return %arg0, %c0_i32 : i32, i32
  }
  func.func @transform_1(%arg0: i32) -> (i32, i32) {
    %c0_i32 = arith.constant 0 : i32
    %c0_i32_0 = arith.constant 0 : i32
    return %arg0, %c0_i32 : i32, i32
  }
  func.func @transform_2(%arg0: i32) -> (i32, i32) {
    %c0_i32 = arith.constant 0 : i32
    %c0_i32_0 = arith.constant 0 : i32
    %c0_i32_1 = arith.constant 0 : i32
    return %c0_i32, %c0_i32_0 : i32, i32
  }
  func.func @transform_3(%arg0: i32) -> (i32, i32) {
    %c0_i32 = arith.constant 0 : i32
    %c0_i32_0 = arith.constant 0 : i32
    %c0_i32_1 = arith.constant 0 : i32
    return %c0_i32, %c0_i32_0 : i32, i32
  }
  func.func @transform_4(%arg0: i32) -> (i32, i32) {
    %c0_i32 = arith.constant 0 : i32
    %c0_i32_0 = arith.constant 0 : i32
    %c0_i32_1 = arith.constant 0 : i32
    return %c0_i32, %c0_i32_0 : i32, i32
  }
  func.func @transform_5(%arg0: i32) -> (i32, i32) {
    %c0_i32 = arith.constant 0 : i32
    %c0_i32_0 = arith.constant 0 : i32
    %c0_i32_1 = arith.constant 0 : i32
    return %c0_i32, %c0_i32_0 : i32, i32
  }
  func.func @transform_6(%arg0: i32) -> (i32, i32) {
    %c0_i32 = arith.constant 0 : i32
    %c0_i32_0 = arith.constant 0 : i32
    %c0_i32_1 = arith.constant 0 : i32
    return %c0_i32, %c0_i32_0 : i32, i32
  }
  func.func @transform_7(%arg0: i32) -> (i32, i32) {
    %c0_i32 = arith.constant 0 : i32
    %c0_i32_0 = arith.constant 0 : i32
    %c0_i32_1 = arith.constant 0 : i32
    return %c0_i32, %c0_i32_0 : i32, i32
  }
  func.func @transform_8(%arg0: i32) -> i32 {
    %c0_i32 = arith.constant 0 : i32
    %c0_i32_0 = arith.constant 0 : i32
    return %c0_i32 : i32
  }
  func.func @transform_9(%arg0: i32) -> (i32, i32) {
    %c0_i32 = arith.constant 0 : i32
    %c0_i32_0 = arith.constant 0 : i32
    return %arg0, %c0_i32 : i32, i32
  }
}

</mosaic_0001>

<bundles_post_ra>
// kernel: tpu_custom_call.1
= control target key start
LH: loop header
LB: loop body
LE: loop exit
PB: predicated region body
PF: predicated region fallthrough
CT: control target
= control target key end

     0   :  { %15 = vsyncpa [#allocation4], 0  ;;  %s510_s0 = inlined_call_operand.hbm [shape: bf16[8,16], index: 0, kind: input, shape index: {}]   ;;  %s511_s1 = inlined_call_operand.vmem [shape: bf16[8,8], index: 1, kind: input, shape index: {}]   ;;  %s512_s2 = inlined_call_operand.hbm [shape: bf16[16,32], index: 2, kind: input, shape index: {}]   ;;  %s513_s3 = inlined_call_operand.hbm [shape: bf16[8,32], index: 3, kind: input, shape index: {}]   ;;  %s514_s4 = inlined_call_operand.vmem [shape: f32[1,32], index: 4, kind: input, shape index: {}]   ;;  %s515_s5 = inlined_call_operand.vmem [shape: bf16[32,32], index: 5, kind: input, shape index: {}]   ;;  %s516_s6 = inlined_call_operand.vmem [shape: f32[1,32], index: 6, kind: input, shape index: {}]   ;;  %s517_s7 = inlined_call_operand.vmem [shape: f32[1,32], index: 7, kind: input, shape index: {}]   ;;  %s518_s8 = inlined_call_operand.<no memory space> [shape: f32[1], index: 8, kind: input, shape index: {}]   ;;  %s519_s9 = inlined_call_operand.vmem [shape: f32[8,1], index: 9, kind: output, shape index: {}]  }
   0x1   :  { %16 = vsyncpa [#allocation6], 0  ;;  %s390_s30 = smov [#allocation5]   ;;  %s320_s13 = scalar_lea.hbm %s512_s2, 128 }
   0x2   :  { %s34_s10 = sshll.u32 %s390_s30, 4  ;;  %p321_p0 = scmp.ne.s32.totalorder %s512_s2, %s320_s13  ;;  %s35_s10 = int_to_ptr.vmem [resolvable:$true] %s34_s10 }
   0x3   :  { %p324_p1 = scmp.lt.u32.totalorder %s320_s13, %s512_s2 }
   0x5   :  { %p326_p2 = pnand %p324_p1, %p321_p0 }
   0x7   :  { %329 = shalt.err (!%p326_p2)
}
   0x8   :  { %s330_s18 = scalar_lea.vmem %s35_s10, 128  ;;  %p335_p4 = scmp.lt.s32.totalorder %s35_s10, %s35_s10 }
   0x9   :  { %p331_p3 = scmp.ne.s32.totalorder %s35_s10, %s330_s18  ;;  %p336_p5 = scmp.lt.s32.totalorder %s330_s18, %s330_s18 }
   0xb   :  { %p337_p6 = por %p336_p5, %p335_p4 }
   0xd   :  { %p338_p7 = pnand %p337_p6, %p331_p3 }
   0xf   :  { %341 = shalt.err (!%p338_p7)
}
  0x10   :  { %s391_s19 = smov 64   ;;  %s392_s20 = smov 4  }
  0x11   :  { %40 = dma.hbm_to_vmem [thread:$0]  %s512_s2, 128, %s35_s10, [#allocation6], %s391_s19, %s391_s19, %s392_s20  }
  0x12   :  { %s393_s23 = smov [#allocation3]   ;;  %s394_s25 = smov [#allocation7]  }
  0x13   :  { %s23_s24 = sshll.u32 %s393_s23, 4  ;;  %s47_s26 = sshll.u32 %s394_s25, 4  ;;  %s24_s24 = int_to_ptr.vmem [resolvable:$true] %s23_s24  ;;  %s48_s26 = int_to_ptr.vmem [resolvable:$true] %s47_s26 }
  0x14   :  { %s342_s29 = scalar_lea.hbm %s510_s0, 64 }
  0x15   :  { %p343_p8 = scmp.ne.s32.totalorder %s510_s0, %s342_s29  ;;  %p346_p9 = scmp.lt.u32.totalorder %s342_s29, %s510_s0 }
  0x17   :  { %p348_p10 = pnand %p346_p9, %p343_p8 }
  0x19   :  { %351 = shalt.err (!%p348_p10)
}
  0x1a   :  { %s352_s2 = scalar_lea.vmem %s24_s24, 64  ;;  %p357_p12 = scmp.lt.s32.totalorder %s24_s24, %s24_s24 }
  0x1b   :  { %p353_p11 = scmp.ne.s32.totalorder %s24_s24, %s352_s2  ;;  %p358_p13 = scmp.lt.s32.totalorder %s352_s2, %s352_s2 }
  0x1d   :  { %p359_p0 = por %p358_p13, %p357_p12 }
  0x1f   :  { %p360_p1 = pnand %p359_p0, %p353_p11 }
  0x21   :  { %363 = shalt.err (!%p360_p1)
}
  0x22   :  { %26 = dma.hbm_to_vmem [thread:$0]  %s510_s0, 64, %s24_s24, [#allocation4]  }
  0x23   :  { %s364_s17 = scalar_lea.hbm %s513_s3, 64 }
  0x24   :  { %p365_p2 = scmp.ne.s32.totalorder %s513_s3, %s364_s17  ;;  %p368_p3 = scmp.lt.u32.totalorder %s364_s17, %s513_s3 }
  0x26   :  { %p370_p4 = pnand %p368_p3, %p365_p2 }
  0x28   :  { %373 = shalt.err (!%p370_p4)
}
  0x29   :  { %s374_s22 = scalar_lea.vmem %s48_s26, 64  ;;  %p379_p6 = scmp.lt.s32.totalorder %s48_s26, %s48_s26 }
  0x2a   :  { %p375_p5 = scmp.ne.s32.totalorder %s48_s26, %s374_s22  ;;  %p380_p7 = scmp.lt.s32.totalorder %s374_s22, %s374_s22 }
  0x2c   :  { %p381_p8 = por %p380_p7, %p379_p6 }
  0x2e   :  { %p382_p9 = pnand %p381_p8, %p375_p5 }
  0x30   :  { %385 = shalt.err (!%p382_p9)
}
  0x31   :  { %50 = dma.hbm_to_vmem [thread:$0]  %s513_s3, 64, %s48_s26, [#allocation6]  }
  0x32   :  { %386 = dma.done.wait [#allocation4], 64  }
  0x33   :  { %387 = vsyncadd [#allocation4], 4294967232 }
  0x34   :  { %388 = dma.done.wait [#allocation6], 192  }
  0x35   :  { %389 = vsyncadd [#allocation6], 4294967104  ;;  %v395_v0 = vmov 0.0   ;;  %vm396_vm0 = vmmov 0   ;;  %vm80_vm1 = vcmask 1043456   ;;  %v317_v3 = vld [vmem:[#allocation5] sm:$0xff]   ;;  %v264_v31 = vstv %s518_s8 }
  0x36   :  { %290 = vmatprep.subr.bf16.mxu0 %v395_v0  ;;  %296 = vmatprep.subr.bf16.mxu1 %v395_v0  ;;  %v75_v1 = vld [vmem:[#allocation7] sm:$0xf]  ;;  %v74_v4 = vld [vmem:[%s511_s1] sm:$0xf]  ;;  %vm76_vm2 = vcmask 64512   ;;  %vm130_vm3 = vcmask 130048  }
  0x37   :  { %292 = vmatprep.mubr.msk.bf16.mxu0 %vm396_vm0, %v395_v0  ;;  %298 = vmatprep.mubr.msk.bf16.mxu1 %vm396_vm0, %v395_v0  ;;  %v82_v2 = vsel %vm80_vm1, %v75_v1, 0  ;;  %v71_v5 = vld [vmem:[#allocation3] sm:$0xf]  ;;  %v319_v7 = vld [vmem:[%s515_s5 + $0x8] sm:$0xff]   ;;  %vm207_vm4 = vcmask 261120   ;;  %vm266_vm5 = vcmask 7168  }
  0x38   :  { %291 = vmatpush3.bf16.msra.mxu0 %v82_v2  ;;  %297 = vmatpush3.bf16.msra.mxu1 %v317_v3  ;;  %v318_v6 = vld [vmem:[%s515_s5] sm:$0xff]  }
  0x39   :  { %302 = vmatprep.subr.bf16.mxu0 %v395_v0  ;;  %v277_v11 = vld [vmem:[%s514_s4] ss:$0 sm:$0xff] }
  0x3a   :  { %v278_v21 = vld [vmem:[%s516_s6] ss:$0 sm:$0xff] }
  0x3b   :  { %293 = vmatmul.mubr.msk.bf16.vlgmr.msra.gmra.mrb[0].mxu0 %vm76_vm2, %v74_v4  ;;  %299 = vmatmul.mubr.msk.bf16.vlgmr.msra.gmra.mrb[0].mxu1 %vm130_vm3, %v71_v5  ;;  %v282_v26 = vld [vmem:[%s517_s7] ss:$0 sm:$0xff] }
  0x3c   :  { %306 = vmatprep.mubr.msk.bf16.mxu0 %vm396_vm0, %v395_v0  ;;  %303 = vmatpush3.bf16.msra.mxu0 %v318_v6 }
  0x3d   :  { %304 = vmatprep.subr.bf16.mxu0 %v395_v0 }
  0x40   :  { %305 = vmatpush3.bf16.msra.mxu0 %v319_v7 }
 0x10e   :  { %v118_v8 = vpop.f32.mrb[0].mxu0  ;;  %v168_v10 = vpop.f32.mrb[0].mxu1 }
 0x10f   :  { %v294_v9 = vpop.f32.mrb[1].mxu0  ;;  %v169_v12 = vadd.f32 %v168_v10, %v118_v8  ;;  %v300_v14 = vpop.f32.mrb[1].mxu1 }
 0x110   :  { %v121_v13 = vpop.f32.mrb[2].mxu0  ;;  %v171_v16 = vpop.f32.mrb[2].mxu1 }
 0x111   :  { %v295_v15 = vpop.f32.mrb[3].mxu0  ;;  %v181_v17 = vadd.f32 %v277_v11, %v169_v12  ;;  %v301_v18 = vpop.f32.mrb[3].mxu1 }
 0x113   :  { %v182_v19 = vmax.f32 %v181_v17, 0.0 }
 0x115   :  { %v183_v20 = vpack.c.bf16 %v182_v19, %v182_v19 }
 0x117   :  { %307 = vmatmul.mubr.msk.bf16.vlgmr.msra.gmra.mrb[4].mxu0 %vm207_vm4, %v183_v20 }
 0x1ea   :  { %v245_v22 = vpop.f32.mrb[4].mxu0 }
 0x1eb   :  { %v246_v23 = vadd.f32 %v278_v21, %v245_v22  ;;  %v308_v24 = vpop.f32.mrb[5].mxu0 }
 0x1ec   :  { %v248_v25 = vpop.f32.mrb[6].mxu0 }
 0x1ed   :  { %v251_v27 = vmax.f32 %v246_v23, 0.0  ;;  %v309_v28 = vpop.f32.mrb[7].mxu0 }
 0x1ef   :  { %v259_v29 = vmul.f32 %v282_v26, %v251_v27 }
 0x1f1   :  { %v260_v30 = vsel %vm207_vm4, %v259_v29, 0.0 }
 0x1f2   :  { %261 = vadd.xlane.f32.xlu0 %v260_v30 }
 0x27f   :  { %v262_v32 = vpop.xlane.xlu0 %261 }
 0x280   :  { %v265_v33 = vadd.f32 %v264_v31, %v262_v32 }
 0x282   :  { %267 = vst.msk [vmem:[%s519_s9] sm:$0xff] %vm266_vm5, %v265_v33 }
 0x283   :  { %272 = vsyncpa [#allocation4], 1 }
 0x284   :  { %273 = vsyncpa [#allocation6], 1 }

</bundles_post_ra>
